<compile_context>
chip_gen: v7x
topology: tpu7x:2x2x1
jax: 0.10.0
libtpu: 0.0.40
codegen_flags: <defaults>
</compile_context>

<pallas_src>
import functools
from types import SimpleNamespace

import numpy as np
import jax
import jax.numpy as jnp
from jax import lax
from jax.experimental import pallas as pl
from jax.experimental.pallas import tpu as pltpu

_SENTINEL = 2 ** 30                 # linear id for out-of-range points (sorts last)
_LANE = 128
_TILE_N_MAX = 131072                # max lanes per grid step for the coord kernel
_FEATS_VMEM_BYTES_MAX = 24 << 20    # keep sorted feats resident in VMEM below this


def _ceil_div(a, b):
    return -(-a // b)


def _round_up(a, b):
    return _ceil_div(a, b) * b


# ----------------------------------------------------------------------------
# Kernel A: per-point linear voxel id (elementwise, lane-dense over N)
# ----------------------------------------------------------------------------
def _coord_kernel(xyz_ref, lin_ref, *, pc_min, inv_vsize, grid_xyz):
    # xyz_ref: (3, TILE_N) f32    lin_ref: (1, TILE_N) int32
    gx, gy, gz = grid_xyz
    x = xyz_ref[0:1, :]
    y = xyz_ref[1:2, :]
    z = xyz_ref[2:3, :]
    # constant reciprocal multiply instead of a per-element divide.
    # NOTE: f32 boundary rounding can differ by one voxel from an f64 divide.
    cx = jnp.floor((x - pc_min[0]) * inv_vsize[0]).astype(jnp.int32)
    cy = jnp.floor((y - pc_min[1]) * inv_vsize[1]).astype(jnp.int32)
    cz = jnp.floor((z - pc_min[2]) * inv_vsize[2]).astype(jnp.int32)
    valid = ((cx >= 0) & (cx < gx) &
             (cy >= 0) & (cy < gy) &
             (cz >= 0) & (cz < gz))
    lin = cz * (gx * gy) + cy * gx + cx
    lin_ref[...] = jnp.where(valid, lin, _SENTINEL)    # direct row store, no concat


def _point_linear_ids(xyz_T, pc_min, inv_vsize, grid_xyz, tile_n):
    """xyz_T: (3, Np) f32 with Np % tile_n == 0.  Returns (1, Np) int32."""
    _, Np = xyz_T.shape
    kernel = functools.partial(_coord_kernel, pc_min=pc_min,
                               inv_vsize=inv_vsize, grid_xyz=grid_xyz)
    return pl.pallas_call(
        kernel,
        out_shape=jax.ShapeDtypeStruct((1, Np), jnp.int32),
        grid=(Np // tile_n,),
        in_specs=[pl.BlockSpec((3, tile_n), lambda i: (0, i))],
        out_specs=pl.BlockSpec((1, tile_n), lambda i: (0, i)),
        compiler_params=pltpu.CompilerParams(
            dimension_semantics=("parallel",),
            # ~32*tile_n bytes actually used; raise the scoped limit so the
            # large tiles also clear v5e's 16 MiB default.
            vmem_limit_bytes=32 * 1024 * 1024),
    )(xyz_T)


# ----------------------------------------------------------------------------
# Kernel B: contiguous-run copy of sorted features -> (V, P, D) voxel slab.
# voxel_start / voxel_num_points are scalar-prefetched into SMEM; each voxel's
# points are a contiguous run of feats_sorted, so per voxel this is one
# dynamic-start (P, D) slice plus a p < count mask — no generic gather.
# ----------------------------------------------------------------------------
def _gather_kernel(start_ref, count_ref, feats_ref, out_ref, *, P, TV):
    base = pl.program_id(0) * TV

    def body(v, carry):
        s = start_ref[base + v]            # start row of this voxel's run
        c = count_ref[base + v]            # number of valid points (<= P)
        rows = feats_ref[pl.ds(s, P), :]   # (P, D) contiguous run (guard rows are 0)
        keep = lax.broadcasted_iota(jnp.int32, (P, 1), 0) < c
        out_ref[v] = jnp.where(keep, rows, 0.0).astype(out_ref.dtype)
        return carry

    lax.fori_loop(0, TV, body, 0)


def _pick_tv(V):
    for tv in (512, 256, 128, 64, 32, 16, 8, 4, 2, 1):
        if V % tv == 0:
            return tv
    return 1


def _voxel_gather_pallas(feats_guard, voxel_start, num_points, V, P):
    Ng, D = feats_guard.shape
    TV = _pick_tv(V)
    itemsize = feats_guard.dtype.itemsize
    need = 2 * Ng * D * itemsize + 2 * TV * P * D * itemsize + (4 << 20)
    kernel = functools.partial(_gather_kernel, P=P, TV=TV)
    return pl.pallas_call(
        kernel,
        out_shape=jax.ShapeDtypeStruct((V, P, D), feats_guard.dtype),
        grid_spec=pltpu.PrefetchScalarGridSpec(
            num_scalar_prefetch=2,                       # voxel_start, num_points -> SMEM
            grid=(V // TV,),
            in_specs=[pl.BlockSpec((Ng, D), lambda i, s, c: (0, 0))],   # resident feats
            out_specs=pl.BlockSpec((TV, P, D), lambda i, s, c: (i, 0, 0)),
        ),
        compiler_params=pltpu.CompilerParams(
            dimension_semantics=("parallel",),
            vmem_limit_bytes=int(max(32 << 20, need))),
    )(voxel_start, num_points, feats_guard)


# ----------------------------------------------------------------------------
# Hard voxelizer (== DynamicScatter-style voxel generator used by the module)
# ----------------------------------------------------------------------------
def voxelize(points, pc_range, voxel_size, max_voxels, max_points):
    N, D = points.shape
    V, P = int(max_voxels), int(max_points)

    pc_range = np.asarray(pc_range, np.float64)
    voxel_size = np.asarray(voxel_size, np.float64)
    grid = np.round((pc_range[3:6] - pc_range[0:3]) / voxel_size).astype(np.int64)
    gx, gy, gz = int(grid[0]), int(grid[1]), int(grid[2])
    # TODO(synk): for grids with gx*gy*gz >= 2^30 an int64 linear-id path is needed.
    assert gx * gy * gz < _SENTINEL, "grid too large for int32 linear voxel ids"

    pc_min = tuple(float(v) for v in pc_range[0:3])
    inv_vsize = tuple(float(1.0 / v) for v in voxel_size)

    # --- tiling over points: large lane-dense tiles, >=2 steps (v7x megacore),
    #     tiny pad (< num_steps*128 + 127 lanes) that is sliced off before sort.
    n128 = _round_up(max(N, 1), _LANE)
    num_steps = max(2, _ceil_div(n128, _TILE_N_MAX)) if n128 >= 2 * _LANE else 1
    tile_n = _round_up(_ceil_div(n128, num_steps), _LANE)
    Np = tile_n * num_steps
    pad = Np - N

    xyz_T = points[:, :3].astype(jnp.float32).T                      # (3, N)
    if pad:
        pad_col = jnp.asarray(
            np.asarray(pc_range[0:3] - voxel_size, np.float32).reshape(3, 1))
        xyz_T = jnp.concatenate(
            [xyz_T, jnp.broadcast_to(pad_col, (3, pad))], axis=1)    # (3, Np)

    lin_full = _point_linear_ids(xyz_T, pc_min, inv_vsize,
                                 (gx, gy, gz), tile_n)               # (1, Np)
    lin = lin_full[0, :N]                                            # unpadded keys only

    # --- stable sort of point ids by voxel id; invalid points (sentinel) go last.
    order = jnp.argsort(lin)                                         # stable
    sl = lin[order]
    sv = sl < _SENTINEL
    idx = jnp.arange(N, dtype=jnp.int32)
    diff = jnp.concatenate([jnp.ones((1,), bool), sl[1:] != sl[:-1]])
    is_new = sv & diff
    vslot = jnp.cumsum(is_new.astype(jnp.int32)) - 1                 # voxel slot per point

    # per-voxel start index in the sorted array (N == empty) and point counts
    tgt_new = jnp.where(is_new & (vslot < V), vslot, V)              # V -> dropped
    voxel_start = jnp.full((V,), N, jnp.int32).at[tgt_new].set(idx, mode='drop')
    tgt_cnt = jnp.where(sv & (vslot < V), vslot, V)
    counts = jnp.zeros((V,), jnp.int32).at[tgt_cnt].add(1, mode='drop')
    num_points = jnp.minimum(counts, P)                              # hard cap

    # --- voxel coordinates: decode z/y/x from the linear id at each segment start
    #     (only V values; empty voxels decode from id 0 -> (0,0,0), num_points 0).
    sl_guard = jnp.concatenate([sl, jnp.zeros((1,), sl.dtype)])
    lin_v = sl_guard[jnp.minimum(voxel_start, N)]                    # (V,)
    cz = lin_v // (gx * gy)
    rem = lin_v - cz * (gx * gy)
    cy = rem // gx
    cx = rem - cy * gx
    coordinates = jnp.stack([cz, cy, cx], axis=1).astype(jnp.int32)  # (V, 3) z,y,x
    # NOTE: voxels are emitted in ascending linear-id order and overflow beyond V
    # drops the highest ids, which differs from torch's first-appearance policy.

    # --- voxel features: each voxel's points are contiguous in sorted order.
    feats_sorted = jnp.take(points, order, axis=0)                   # (N, D)
    guard_rows = max(P, 8)
    feats_bytes = (N + guard_rows) * D * np.dtype(points.dtype).itemsize
    if feats_bytes <= _FEATS_VMEM_BYTES_MAX:
        feats_guard = jnp.concatenate(
            [feats_sorted, jnp.zeros((guard_rows, D), points.dtype)], axis=0)
        voxels = _voxel_gather_pallas(feats_guard, voxel_start, num_points, V, P)
    else:
        # TODO(synk): stream sorted feats through VMEM with manual double-buffered
        # DMA for very large point clouds instead of this XLA gather fallback.
        feats_guard = jnp.concatenate(
            [feats_sorted, jnp.zeros((1, D), points.dtype)], axis=0)
        p_ids = jnp.arange(P, dtype=jnp.int32)
        src = voxel_start[:, None] + p_ids[None, :]
        src = jnp.where(p_ids[None, :] < num_points[:, None], src, N)
        voxels = feats_guard[src]

    return voxels, coordinates, num_points


# ----------------------------------------------------------------------------
# DataProcessor mirroring DataProcessorPytorch
# ----------------------------------------------------------------------------
class DataProcessorPallas:
    def __init__(self, processor_configs, point_cloud_range, training,
                 pview_ranges, num_pviews):
        self.point_cloud_range = np.asarray(point_cloud_range, np.float64)
        self.pview_ranges = np.asarray(pview_ranges, np.float64)
        self.training = training
        self.num_pviews = num_pviews
        assert self.num_pviews == len(self.pview_ranges)
        self.mode = 'train' if training else 'test'
        self.grid_size = self.voxel_size = None
        self.pview_grid_sizes = self.pview_voxel_sizes = None
        self.data_processor_queue = []
        for cur_cfg in processor_configs:
            cur_processor = getattr(self, cur_cfg.NAME)(config=cur_cfg)
            self.data_processor_queue.append(cur_processor)

    def _make_generator(self, pc_range, voxel_size, config):
        return jax.jit(functools.partial(
            voxelize,
            pc_range=tuple(float(v) for v in pc_range),
            voxel_size=tuple(float(v) for v in voxel_size),
            max_voxels=int(config.MAX_NUMBER_OF_VOXELS[self.mode]),
            max_points=int(config.MAX_POINTS_PER_VOXEL)))

    def transform_points_to_voxels(self, batch_dict=None, config=None,
                                   voxel_generator=None):
        if batch_dict is None:
            voxel_generator = self._make_generator(
                self.point_cloud_range, config.VOXEL_SIZE, config)
            grid_size = (self.point_cloud_range[3:6] - self.point_cloud_range[0:3]) \
                / np.array(config.VOXEL_SIZE)
            self.grid_size = np.round(grid_size).astype(np.int32)
            self.voxel_size = config.VOXEL_SIZE
            return functools.partial(self.transform_points_to_voxels,
                                     voxel_generator=voxel_generator)
        points = batch_dict['points']
        voxels, coordinates, num_points = voxel_generator(points)
        if not batch_dict['use_lead_xyz']:
            voxels = voxels[..., 3:]
        batch_dict['voxels'] = voxels
        batch_dict['voxel_coords'] = coordinates
        batch_dict['voxel_num_points'] = num_points
        return batch_dict

    def transform_points_in_pviews_to_voxels(self, batch_dict=None, config=None,
                                             voxel_generators=None):
        if batch_dict is None:
            voxel_generators = []
            self.pview_grid_sizes = []
            self.pview_voxel_sizes = []
            voxel_sizes = config.VOXEL_SIZES
            for i in range(self.num_pviews):
                pview_range = self.pview_ranges[i]
                voxel_size = voxel_sizes[i]
                voxel_generators.append(
                    self._make_generator(pview_range, voxel_size, config))
                grid_size = (pview_range[3:6] - pview_range[0:3]) / np.array(voxel_size)
                self.pview_grid_sizes.append(np.round(grid_size).astype(np.int32))
                self.pview_voxel_sizes.append(voxel_size)
            return functools.partial(self.transform_points_in_pviews_to_voxels,
                                     voxel_generators=voxel_generators)
        for i in range(len(voxel_generators)):
            points = batch_dict[f'points_pviews_{i}']
            voxels, coordinates, num_points = voxel_generators[i](points)
            if not batch_dict['use_lead_xyz']:
                voxels = voxels[..., 3:]
            batch_dict[f'pview_voxels_{i}'] = voxels
            batch_dict[f'pview_voxel_coords_{i}'] = coordinates
            batch_dict[f'pview_voxel_num_points_{i}'] = num_points
        return batch_dict

    def forward(self, batch_dict):
        for cur_processor in self.data_processor_queue:
            batch_dict = cur_processor(batch_dict=batch_dict)
        return batch_dict


# ----------------------------------------------------------------------------
if __name__ == "__main__":
    key = jax.random.PRNGKey(0)
    k1, k2, k3 = jax.random.split(key, 3)

    point_cloud_range = np.array([0., 0., 0., 8., 8., 4.])
    pview_ranges = np.array([[0., 0., 0., 4., 4., 4.],
                             [0., 0., -1., 8., 8., 3.]])

    processor_configs = [
        SimpleNamespace(NAME='transform_points_to_voxels',
                        VOXEL_SIZE=[1., 1., 1.],
                        MAX_NUMBER_OF_VOXELS={'train': 64, 'test': 64},
                        MAX_POINTS_PER_VOXEL=8),
        SimpleNamespace(NAME='transform_points_in_pviews_to_voxels',
                        VOXEL_SIZES=[[0.5, 0.5, 1.], [1., 1., 1.]],
                        MAX_NUMBER_OF_VOXELS={'train': 64, 'test': 64},
                        MAX_POINTS_PER_VOXEL=8),
    ]

    proc = DataProcessorPallas(processor_configs, point_cloud_range,
                               training=True, pview_ranges=pview_ranges,
                               num_pviews=2)

    # points: (N, 3 + C) with C = 1 (intensity); some points fall out of range
    points = jax.random.uniform(k1, (256, 4), minval=-1.0, maxval=9.0)
    pts_pv0 = jax.random.uniform(k2, (128, 4), minval=-0.5, maxval=4.5)
    pts_pv1 = jax.random.uniform(k3, (128, 4), minval=-1.5, maxval=8.5)

    batch_dict = {
        'points': points,
        'points_pviews_0': pts_pv0,
        'points_pviews_1': pts_pv1,
        'use_lead_xyz': True,
    }

    out = proc.forward(batch_dict)
    jax.block_until_ready((out['voxels'], out['voxel_coords'],
                           out['voxel_num_points'],
                           out['pview_voxels_0'], out['pview_voxel_coords_0'],
                           out['pview_voxel_num_points_0'],
                           out['pview_voxels_1'], out['pview_voxel_coords_1'],
                           out['pview_voxel_num_points_1']))
    print("KERNEL_OK")
</pallas_src>

<mosaic_0001>
module attributes {stable_mosaic.version = 11 : i64} {
  func.func private @main(%arg0: i32) attributes {dimension_semantics = [#tpu.dimension_semantics<core_parallel>], iteration_bounds = array<i64: 2>, tpu.core_type = #tpu.core_type<sc_scalar_subcore>, window_params = []} {
    return
  }
}

module attributes {stable_mosaic.version = 11 : i64} {
  func.func private @main(%arg0: i32) attributes {dimension_semantics = [#tpu.dimension_semantics<core_parallel>], iteration_bounds = array<i64: 2>, tpu.core_type = #tpu.core_type<sc_scalar_subcore>, window_params = []} {
    return
  }
}

module attributes {stable_mosaic.version = 11 : i64} {
  func.func @_coord_kernel(%arg0: i32, %arg1: memref<3x128xf32, #tpu.memory_space<vmem>>, %arg2: memref<1x128xi32, #tpu.memory_space<vmem>>) attributes {dimension_semantics = [#tpu.dimension_semantics<parallel>], iteration_bounds = array<i64: 2>, scalar_prefetch = 0 : i64, scratch_operands = 0 : i64, tpu.core_type = #tpu.core_type<tc>, window_params = [{transform_indices = @transform_0, window_bounds = array<i64: 3, 128>}, {transform_indices = @transform_1, window_bounds = array<i64: 1, 128>}]} {
    %c0 = arith.constant 0 : index
    %c0_0 = arith.constant 0 : index
    %0 = vector.load %arg1[%c0, %c0_0] : memref<3x128xf32, #tpu.memory_space<vmem>>, vector<1x128xf32>
    %c1 = arith.constant 1 : index
    %c0_1 = arith.constant 0 : index
    %1 = vector.load %arg1[%c1, %c0_1] : memref<3x128xf32, #tpu.memory_space<vmem>>, vector<1x128xf32>
    %c2 = arith.constant 2 : index
    %c0_2 = arith.constant 0 : index
    %2 = vector.load %arg1[%c2, %c0_2] : memref<3x128xf32, #tpu.memory_space<vmem>>, vector<1x128xf32>
    %cst = arith.constant 0.000000e+00 : f32
    %3 = vector.broadcast %cst : f32 to vector<1x128xf32>
    %4 = arith.subf %0, %3 : vector<1x128xf32>
    %cst_3 = arith.constant 1.000000e+00 : f32
    %5 = vector.broadcast %cst_3 : f32 to vector<1x128xf32>
    %6 = arith.mulf %4, %5 : vector<1x128xf32>
    %7 = math.floor %6 : vector<1x128xf32>
    %8 = arith.fptosi %7 : vector<1x128xf32> to vector<1x128xi32>
    %cst_4 = arith.constant 0.000000e+00 : f32
    %9 = vector.broadcast %cst_4 : f32 to vector<1x128xf32>
    %10 = arith.subf %1, %9 : vector<1x128xf32>
    %cst_5 = arith.constant 1.000000e+00 : f32
    %11 = vector.broadcast %cst_5 : f32 to vector<1x128xf32>
    %12 = arith.mulf %10, %11 : vector<1x128xf32>
    %13 = math.floor %12 : vector<1x128xf32>
    %14 = arith.fptosi %13 : vector<1x128xf32> to vector<1x128xi32>
    %cst_6 = arith.constant 0.000000e+00 : f32
    %15 = vector.broadcast %cst_6 : f32 to vector<1x128xf32>
    %16 = arith.subf %2, %15 : vector<1x128xf32>
    %cst_7 = arith.constant 1.000000e+00 : f32
    %17 = vector.broadcast %cst_7 : f32 to vector<1x128xf32>
    %18 = arith.mulf %16, %17 : vector<1x128xf32>
    %19 = math.floor %18 : vector<1x128xf32>
    %20 = arith.fptosi %19 : vector<1x128xf32> to vector<1x128xi32>
    %c0_i32 = arith.constant 0 : i32
    %21 = vector.broadcast %c0_i32 : i32 to vector<1x128xi32>
    %22 = arith.cmpi sge, %8, %21 : vector<1x128xi32>
    %c8_i32 = arith.constant 8 : i32
    %23 = vector.broadcast %c8_i32 : i32 to vector<1x128xi32>
    %24 = arith.cmpi slt, %8, %23 : vector<1x128xi32>
    %25 = arith.andi %22, %24 : vector<1x128xi1>
    %c0_i32_8 = arith.constant 0 : i32
    %26 = vector.broadcast %c0_i32_8 : i32 to vector<1x128xi32>
    %27 = arith.cmpi sge, %14, %26 : vector<1x128xi32>
    %28 = arith.andi %25, %27 : vector<1x128xi1>
    %c8_i32_9 = arith.constant 8 : i32
    %29 = vector.broadcast %c8_i32_9 : i32 to vector<1x128xi32>
    %30 = arith.cmpi slt, %14, %29 : vector<1x128xi32>
    %31 = arith.andi %28, %30 : vector<1x128xi1>
    %c0_i32_10 = arith.constant 0 : i32
    %32 = vector.broadcast %c0_i32_10 : i32 to vector<1x128xi32>
    %33 = arith.cmpi sge, %20, %32 : vector<1x128xi32>
    %34 = arith.andi %31, %33 : vector<1x128xi1>
    %c4_i32 = arith.constant 4 : i32
    %35 = vector.broadcast %c4_i32 : i32 to vector<1x128xi32>
    %36 = arith.cmpi slt, %20, %35 : vector<1x128xi32>
    %37 = arith.andi %34, %36 : vector<1x128xi1>
    %c64_i32 = arith.constant 64 : i32
    %38 = vector.broadcast %c64_i32 : i32 to vector<1x128xi32>
    %39 = arith.muli %20, %38 : vector<1x128xi32>
    %c8_i32_11 = arith.constant 8 : i32
    %40 = vector.broadcast %c8_i32_11 : i32 to vector<1x128xi32>
    %41 = arith.muli %14, %40 : vector<1x128xi32>
    %42 = arith.addi %39, %41 : vector<1x128xi32>
    %43 = arith.addi %42, %8 : vector<1x128xi32>
    %c1073741824_i32 = arith.constant 1073741824 : i32
    %44 = vector.broadcast %c1073741824_i32 : i32 to vector<1x128xi32>
    %45 = arith.select %37, %43, %44 : vector<1x128xi1>, vector<1x128xi32>
    %c0_12 = arith.constant 0 : index
    %c0_13 = arith.constant 0 : index
    %46 = vector.load %arg2[%c0_12, %c0_13] : memref<1x128xi32, #tpu.memory_space<vmem>>, vector<1x128xi32>
    tpu.vector_store %arg2[%c0_12, %c0_13], %45 {strides = array<i32>} : memref<1x128xi32, #tpu.memory_space<vmem>>, vector<1x128xi32>,
    return
  }
  func.func @transform_0(%arg0: i32) -> (i32, i32) {
    %c0_i32 = arith.constant 0 : i32
    %c0_i32_0 = arith.constant 0 : i32
    return %c0_i32, %arg0 : i32, i32
  }
  func.func @transform_1(%arg0: i32) -> (i32, i32) {
    %c0_i32 = arith.constant 0 : i32
    %c0_i32_0 = arith.constant 0 : i32
    return %c0_i32, %arg0 : i32, i32
  }
}

module attributes {stable_mosaic.version = 11 : i64} {
  func.func @_gather_kernel(%arg0: i32, %arg1: memref<64xi32, #tpu.memory_space<smem>>, %arg2: memref<64xi32, #tpu.memory_space<smem>>, %arg3: memref<264x4xf32, #tpu.memory_space<vmem>>, %arg4: memref<64x8x4xf32, #tpu.memory_space<vmem>>) attributes {dimension_semantics = [#tpu.dimension_semantics<parallel>], iteration_bounds = array<i64: 1>, scalar_prefetch = 2 : i64, scratch_operands = 0 : i64, tpu.core_type = #tpu.core_type<tc>, window_params = [{pipeline_mode = #tpu.pipeline_mode<synchronous>, transform_indices = @transform_0, window_bounds = array<i64: 264, 4>}, {transform_indices = @transform_1, window_bounds = array<i64: 64, 8, 4>}]} {
    %c64_i32 = arith.constant 64 : i32
    %0 = arith.muli %arg0, %c64_i32 : i32
    %c0_i32 = arith.constant 0 : i32
    %c64_i32_0 = arith.constant 64 : i32
    %1 = arith.addi %c0_i32, %c64_i32_0 : i32
    %c1_i32 = arith.constant 1 : i32
    scf.for %arg5 = %c0_i32 to %1 step %c1_i32  : i32 {
      %2 = arith.addi %0, %arg5 : i32
      %3 = arith.index_cast %2 : i32 to index
      %4 = memref.load %arg1[%3] : memref<64xi32, #tpu.memory_space<smem>>
      %5 = arith.addi %0, %arg5 : i32
      %6 = arith.index_cast %5 : i32 to index
      %7 = memref.load %arg2[%6] : memref<64xi32, #tpu.memory_space<smem>>
      %8 = arith.index_cast %4 : i32 to index
      %c0 = arith.constant 0 : index
      %9 = vector.load %arg3[%8, %c0] : memref<264x4xf32, #tpu.memory_space<vmem>>, vector<8x4xf32>
      %10 = tpu.iota {dimensions = array<i32: 0>} : vector<8x1xi32>
      %11 = vector.broadcast %7 : i32 to vector<8x1xi32>
      %12 = arith.cmpi slt, %10, %11 : vector<8x1xi32>
      %cst = arith.constant 0.000000e+00 : f32
      %13 = vector.shape_cast %12 : vector<8x1xi1> to vector<8x1xi1>
      %14 = vector.broadcast %13 : vector<8x1xi1> to vector<8x4xi1>
      %15 = vector.broadcast %cst : f32 to vector<8x4xf32>
      %16 = arith.select %14, %9, %15 : vector<8x4xi1>, vector<8x4xf32>
      %17 = arith.index_cast %arg5 : i32 to index
      %c0_2 = arith.constant 0 : index
      %c0_3 = arith.constant 0 : index
      %18 = vector.load %arg4[%17, %c0_2, %c0_3] : memref<64x8x4xf32, #tpu.memory_space<vmem>>, vector<1x8x4xf32>
      %19 = vector.shape_cast %18 : vector<1x8x4xf32> to vector<8x4xf32>
      %20 = vector.shape_cast %16 : vector<8x4xf32> to vector<1x8x4xf32>
      tpu.vector_store %arg4[%17, %c0_2, %c0_3], %20 {strides = array<i32>} : memref<64x8x4xf32, #tpu.memory_space<vmem>>, vector<1x8x4xf32>,
    }
    %c64_i32_1 = arith.constant 64 : i32
    return
  }
  func.func @transform_0(%arg0: i32, %arg1: memref<64xi32, #tpu.memory_space<smem>>, %arg2: memref<64xi32, #tpu.memory_space<smem>>) -> (i32, i32) {
    %c0_i32 = arith.constant 0 : i32
    %c0_i32_0 = arith.constant 0 : i32
    %c0_i32_1 = arith.constant 0 : i32
    return %c0_i32, %c0_i32_0 : i32, i32
  }
  func.func @transform_1(%arg0: i32, %arg1: memref<64xi32, #tpu.memory_space<smem>>, %arg2: memref<64xi32, #tpu.memory_space<smem>>) -> (i32, i32, i32) {
    %c0_i32 = arith.constant 0 : i32
    %c0_i32_0 = arith.constant 0 : i32
    %c0_i32_1 = arith.constant 0 : i32
    return %arg0, %c0_i32, %c0_i32_0 : i32, i32, i32
  }
}

</mosaic_0001>

<bundles_post_ra>
// kernel: voxelize.2
= control target key start
LH: loop header
LB: loop body
LE: loop exit
PB: predicated region body
PF: predicated region fallthrough
CT: control target
= control target key end

     0   :  { %s223_s6 = smov 0   ;;  %s244_s0 = inlined_call_operand.vmem [shape: f32[3,256], index: 0, kind: input, shape index: {}]   ;;  %s245_s1 = inlined_call_operand.vmem [shape: s32[1,256], index: 1, kind: output, shape index: {}]  }
   0x1 LB: > { %s183_s7 = sadd.s32 4294967295, %s211_s6   ;;  %p187_p0 = scmp.ge.s32.totalorder %s211_s6, 1  ;;  %s211_s6 = sphi %s223_s6, %s11_s6  }
   0x2   : > { %p86_p1 = scmp.lt.s32.totalorder %s211_s6, 3 }
   0x4   : > { %p87_p2 = pnand %p187_p0, %p86_p1 }
   0x5   : > { %p103_p3 = scmp.lt.s32.totalorder (!%p87_p2), %s183_s7, 1 }
   0x6   : > { %90 = sbr.rel (%p87_p2) target bundleno = 32 (0x20), region = 24 }
   0xd   : > { %s247_s7 = smov (!%p103_p3, %s183_s7), 1 }
   0xe   : > { %s188_s8 = sshll.u32 %s247_s7, 2  ;;  %s109_s14 = scalar_lea.vmem %s245_s1, %s247_s7 }
   0xf   : > { %s106_s11 = scalar_lea.vmem %s244_s0, %s188_s8 }
  0x10   : > { %v110_v0 = vld [vmem:[%s106_s11] sm:$0x1]  ;;  %v111_v1 = vld [vmem:[%s106_s11 + $0x1] sm:$0x1]  ;;  %v112_v2 = vld [vmem:[%s106_s11 + $0x2] sm:$0x1] }
  0x11   : > { %v113_v3 = vfloor.f32 %v110_v0  ;;  %v115_v4 = vfloor.f32 %v111_v1  ;;  %v117_v5 = vfloor.f32 %v112_v2 }
  0x13   : > { %v191_v6 = vtrunc.f32 %v113_v3  ;;  %v193_v7 = vtrunc.f32 %v115_v4  ;;  %v195_v8 = vtrunc.f32 %v117_v5 }
  0x15   : > { %v192_v9 = vcvt.f32.s32 %v191_v6  ;;  %v194_v10 = vcvt.f32.s32 %v193_v7  ;;  %v196_v11 = vcvt.f32.s32 %v195_v8 }
  0x17   : > { %vm119_vm0 = vcmp.ge.s32.totalorder %v192_v9, 0  ;;  %vm120_vm1 = vcmp.lt.s32.totalorder %v192_v9, 8  ;;  %vm122_vm2 = vcmp.ge.s32.totalorder %v194_v10, 0  ;;  %vm124_vm3 = vcmp.lt.s32.totalorder %v194_v10, 8 }
  0x18   : > { %vm121_vm4 = vmand %vm119_vm0, %vm120_vm1  ;;  %vm126_vm5 = vcmp.ge.s32.totalorder %v196_v11, 0  ;;  %v130_v12 = vmul.u32 64, %v196_v11  ;;  %v131_v13 = vmul.u32 8, %v194_v10  ;;  %vm128_vm7 = vcmp.lt.s32.totalorder %v196_v11, 4 }
  0x19   : > { %vm123_vm6 = vmand %vm121_vm4, %vm122_vm2 }
  0x1a   : > { %vm125_vm8 = vmand %vm123_vm6, %vm124_vm3  ;;  %v132_v14 = vadd.s32 %v131_v13, %v130_v12 }
  0x1b   : > { %vm127_vm9 = vmand %vm125_vm8, %vm126_vm5 }
  0x1c   : > { %vm129_vm10 = vmand %vm127_vm9, %vm128_vm7  ;;  %v133_v15 = vadd.s32 %v192_v9, %v132_v14 }
  0x1e   : > { %v134_v16 = vsel %vm129_vm10, %v133_v15, 1073741824 }
  0x1f   : > { %135 = vst [vmem:[%s109_s14] sm:$0x1] %v134_v16 }
  0x20 PF: > { %s11_s6 = sadd.s32 1, %s211_s6  }
  0x21   : > { %p8_p4 = scmp.ge.s32.totalorder %s11_s6, 4  }
  0x23   :  { %10 = sbr.rel (!%p8_p4) target bundleno = 1 (0x1), region = 54 }

// kernel: voxelize.3
= control target key start
LH: loop header
LB: loop body
LE: loop exit
PB: predicated region body
PF: predicated region fallthrough
CT: control target
= control target key end

     0   :  { %s134_s0 = inlined_call_operand.vmem [shape: s32[64], index: 0, kind: input, shape index: {}]   ;;  %s135_s2 = inlined_call_operand.vmem [shape: f32[264,4], index: 2, kind: input, shape index: {}]   ;;  %s136_s3 = inlined_call_operand.vmem [shape: f32[64,8,4], index: 3, kind: output, shape index: {}]   ;;  %s137_s1 = inlined_call_operand.vmem [shape: s32[64], index: 1, kind: input, shape index: {}]  }
   0x1   :  { %s8_s14 = sshll.u32 %s134_s0, 4  ;;  %s12_s17 = sshll.u32 %s137_s1, 4  ;;  %s9_s14 = int_to_ptr.vmem [resolvable:$true] %s8_s14  ;;  %s13_s17 = int_to_ptr.vmem [resolvable:$true] %s12_s17 }
   0x2   :  { %s66_s18 = scalar_lea.vmem %s9_s14, 16  ;;  %p71_p1 = scmp.lt.s32.totalorder %s9_s14, %s9_s14 }
   0x3   :  { %p67_p0 = scmp.ne.s32.totalorder %s9_s14, %s66_s18  ;;  %p72_p2 = scmp.lt.s32.totalorder %s66_s18, %s66_s18 }
   0x5   :  { %p73_p3 = por %p72_p2, %p71_p1 }
   0x7   :  { %p74_p4 = pnand %p73_p3, %p67_p0 }
   0x9   :  { %77 = shalt.err (!%p74_p4)  }
   0xa   :  { %s100_s19 = smov [#allocation3]   ;;  %s78_s20 = scalar_lea.vmem %s13_s17, 16 }
   0xb   :  { %11 = dma.vmem_to_smem %s9_s14, 16, %s100_s19, [#allocation2] }
   0xc   :  { %p79_p5 = scmp.ne.s32.totalorder %s13_s17, %s78_s20  ;;  %p83_p6 = scmp.lt.s32.totalorder %s13_s17, %s13_s17 }
   0xd   :  { %p84_p7 = scmp.lt.s32.totalorder %s78_s20, %s78_s20 }
   0xf   :  { %p85_p8 = por %p84_p7, %p83_p6 }
  0x11   :  { %p86_p9 = pnand %p85_p8, %p79_p5 }
  0x13   :  { %89 = shalt.err (!%p86_p9)  }
  0x14   :  { %s101_s0 = smov [#allocation4]  }
  0x15   :  { %15 = dma.vmem_to_smem %s13_s17, 16, %s101_s0, [#allocation2] }
  0x16   :  { %94 = dma.done.wait [#allocation2], 32 }
  0x17   :  { %95 = vsyncadd [#allocation2], 4294967264 }
  0x18   :  { %17 = sfence }
  0x19   :  { %s96_s1 = smov 0  }
  0x1a LB: > { %v32_v0 = vlaneseq  ;;  %s28_s21 = sld [smem:[#allocation3 + %s98_s1]]  ;;  %s55_s23 = sshll.u32 %s98_s1, 3  ;;  %vm41_vm0 = vcmask 31744   ;;  %s98_s1 = sphi %s96_s1, %s26_s1  }
  0x1b   : > { %s29_s22 = sld [smem:[#allocation4 + %s98_s1]]  ;;  %s40_s29 = scalar_lea.vmem %s136_s3, %s55_s23 }
  0x1c   : > { %v33_v1 = vshrl.u32 %v32_v0, 7  ;;  %s26_s1 = sadd.s32 1, %s98_s1  }
  0x1d   : > { %p23_p10 = scmp.ge.s32.totalorder %s26_s1, 64  }
  0x1f   :  { %25 = sbr.rel (!%p23_p10) target bundleno = 26 (0x1a), region = 33 }
  0x20   : > { %s30_s26 = scalar_lea.vmem %s135_s2, %s28_s21 }
  0x21   : > { %v34_v2 = vstv %s29_s22  ;;  %v31_v3 = vld [vmem:[%s30_s26] sm:$0xff] }
  0x22   : > { %vm35_vm1 = vcmp.lt.s32.totalorder %v33_v1, %v34_v2 }
  0x23   : > { %v38_v4 = vsel %vm35_vm1, %v31_v3, 0.0 }
  0x24   : > { %42 = vst.msk [vmem:[%s40_s29] sm:$0xff] %vm41_vm0, %v38_v4 }

</bundles_post_ra>
